<compile_context>
chip_gen: v7x
topology: tpu7x:2x2x1
jax: 0.10.0
libtpu: 0.0.40
codegen_flags: <defaults>
</compile_context>

<pallas_src>
import jax
import jax.numpy as jnp
from jax.experimental import pallas as pl
from jax.experimental.pallas import tpu as pltpu


def _round_up(x, m):
    return ((x + m - 1) // m) * m


def _predictor_kernel(x_ref, w1_ref, b1_ref, w2_ref, b2_ref, w3t_ref, b3_ref, out_ref):
    f32 = jnp.float32
    # Layer 1: Linear + ReLU  (bf16 MXU inputs, f32 accumulation).
    h1 = jnp.dot(x_ref[...], w1_ref[...], preferred_element_type=f32) + b1_ref[...]
    h1 = jnp.maximum(h1, 0.0)
    # Layer 2: Linear + ReLU.
    h2 = jnp.dot(h1.astype(w2_ref.dtype), w2_ref[...], preferred_element_type=f32) + b2_ref[...]
    h2 = jnp.maximum(h2, 0.0)
    # Layer 3: Linear(H2 -> 1), no activation.  Single output unit -> do it on
    # the VPU/XLU (broadcast multiply + lane reduction) instead of an N=1 MXU matmul.
    out = jnp.sum(h2 * w3t_ref[...], axis=-1, keepdims=True) + b3_ref[...]
    out_ref[...] = out.astype(out_ref.dtype)


def parameter_equimulooc_forward(
    params,
    audio,
    clean_audio,
    transform_parameters=None,
    *,
    conditioned=False,
    block_b=None,
    compute_dtype=jnp.bfloat16,
):
    """ParameterEquiMuLOOC.forward.  Returns the same dict keys as the torch module."""
    if transform_parameters is not None and transform_parameters.ndim == 1:
        transform_parameters = transform_parameters[:, None]  # unsqueeze(-1)

    # Conditioning (if enabled) is concatenated to the predictor input.
    x = jnp.concatenate([audio, clean_audio], axis=-1) if conditioned else audio
    B, Din = x.shape
    H1 = params["w1"].shape[1]
    H2 = params["w2"].shape[1]
    assert params["w1"].shape[0] == Din
    assert params["w2"].shape[0] == H1
    assert params["w3"].shape == (H2, 1)

    # Batch tiling: fill the MXU M dimension (up to 256 rows / step); pad the
    # batch instead of asserting divisibility.
    if block_b is None:
        block_b = min(_round_up(B, 8), 256)
    B_pad = _round_up(B, block_b)
    if B_pad != B:
        x = jnp.pad(x, ((0, B_pad - B), (0, 0)))
    x = x.astype(compute_dtype)

    # Weights for the MXU in compute_dtype (bf16 by default); biases and the
    # 1-wide output head stay f32.
    w1 = params["w1"].astype(compute_dtype)
    w2 = params["w2"].astype(compute_dtype)
    b1 = params["b1"].astype(jnp.float32).reshape(1, H1)
    b2 = params["b2"].astype(jnp.float32).reshape(1, H2)
    w3t = params["w3"].astype(jnp.float32).reshape(1, H2)   # (H2,1) -> (1,H2)
    b3 = params["b3"].astype(jnp.float32).reshape(1, 1)

    grid = (B_pad // block_b,)

    flops = int(2 * B_pad * (Din * H1 + H1 * H2 + H2 * 1))
    bytes_accessed = int(
        x.size * x.dtype.itemsize
        + w1.size * w1.dtype.itemsize
        + w2.size * w2.dtype.itemsize
        + (b1.size + b2.size + w3t.size + b3.size) * 4
        + B_pad * 4
    )

    preds = pl.pallas_call(
        _predictor_kernel,
        out_shape=jax.ShapeDtypeStruct((B_pad, 1), audio.dtype),
        grid=grid,
        in_specs=[
            pl.BlockSpec((block_b, Din), lambda i: (i, 0)),   # x (batch-tiled)
            pl.BlockSpec((Din, H1), lambda i: (0, 0)),        # w1 (resident)
            pl.BlockSpec((1, H1), lambda i: (0, 0)),          # b1
            pl.BlockSpec((H1, H2), lambda i: (0, 0)),         # w2 (resident)
            pl.BlockSpec((1, H2), lambda i: (0, 0)),          # b2
            pl.BlockSpec((1, H2), lambda i: (0, 0)),          # w3^T
            pl.BlockSpec((1, 1), lambda i: (0, 0)),           # b3
        ],
        out_specs=pl.BlockSpec((block_b, 1), lambda i: (i, 0)),
        compiler_params=pltpu.CompilerParams(
            dimension_semantics=("parallel",),
            vmem_limit_bytes=48 * 1024 * 1024,  # safe on v5e/v6e (128 MiB) and v7x (64 MiB)
        ),
        cost_estimate=pl.CostEstimate(
            flops=flops, transcendentals=0, bytes_accessed=bytes_accessed
        ),
    )(x, w1, b1, w2, b2, w3t, b3)

    preds = preds[:B]

    return {
        "embeddings": clean_audio,
        "transformed_embeddings": audio,
        "predicted_parameters": preds,
        "transform_parameters": transform_parameters,
        "gt": transform_parameters,
        "preds": preds,
    }


def _reference_forward(params, audio, clean_audio, *, conditioned, compute_dtype):
    """Plain-JAX reference (same precision policy as the kernel when compute_dtype=bf16)."""
    f32 = jnp.float32
    cd = compute_dtype
    x = jnp.concatenate([audio, clean_audio], axis=-1) if conditioned else audio
    h1 = jax.nn.relu(
        jnp.dot(x.astype(cd), params["w1"].astype(cd), preferred_element_type=f32)
        + params["b1"].reshape(1, -1).astype(f32)
    )
    h2 = jax.nn.relu(
        jnp.dot(h1.astype(cd), params["w2"].astype(cd), preferred_element_type=f32)
        + params["b2"].reshape(1, -1).astype(f32)
    )
    out = (
        jnp.dot(h2, params["w3"].astype(f32), preferred_element_type=f32)
        + params["b3"].reshape(1, -1).astype(f32)
    )
    return out


def init_params(key, embed_dim, predictor_layers=(64, 64), conditioned=False):
    """Synthetic params with torch-Linear-style shapes (stored as (in, out))."""
    H1, H2 = predictor_layers
    Din = embed_dim * 2 if conditioned else embed_dim
    ks = jax.random.split(key, 6)

    def dense(kw, kb, fan_in, fan_out):
        s = 1.0 / jnp.sqrt(jnp.float32(fan_in))
        w = jax.random.uniform(kw, (fan_in, fan_out), jnp.float32, -s, s)
        b = jax.random.uniform(kb, (1, fan_out), jnp.float32, -s, s)
        return w, b

    w1, b1 = dense(ks[0], ks[1], Din, H1)
    w2, b2 = dense(ks[2], ks[3], H1, H2)
    w3, b3 = dense(ks[4], ks[5], H2, 1)
    return {"w1": w1, "b1": b1, "w2": w2, "b2": b2, "w3": w3, "b3": b3}


if __name__ == "__main__":
    k = jax.random.split(jax.random.PRNGKey(0), 8)

    # ---- case 1: default module config (conditioned=False) -----------------
    B, D = 8, 32
    H1, H2 = 64, 64  # small stand-ins for predictor_layers=[2048, 2048]
    params = init_params(k[0], embed_dim=D, predictor_layers=(H1, H2), conditioned=False)
    audio = jax.random.normal(k[1], (B, D), jnp.float32)            # transformed features
    clean_audio = jax.random.normal(k[2], (B, D), jnp.float32)      # clean features
    transform_parameters = jax.random.uniform(k[3], (B,), jnp.float32)

    out = parameter_equimulooc_forward(
        params, audio, clean_audio, transform_parameters, conditioned=False
    )
    preds = jax.block_until_ready(out["predicted_parameters"])

    ref_match = _reference_forward(params, audio, clean_audio,
                                   conditioned=False, compute_dtype=jnp.bfloat16)
    ref_f32 = _reference_forward(params, audio, clean_audio,
                                 conditioned=False, compute_dtype=jnp.float32)
    assert preds.shape == (B, 1)
    assert jnp.allclose(preds, ref_match, atol=1e-3, rtol=1e-3), "mismatch vs matched-precision ref"
    assert jnp.allclose(preds, ref_f32, atol=5e-2, rtol=5e-2), "mismatch vs f32 ref"
    assert out["embeddings"] is clean_audio and out["transformed_embeddings"] is audio
    assert out["transform_parameters"].shape == (B, 1) and out["gt"].shape == (B, 1)
    assert out["preds"] is out["predicted_parameters"]

    # ---- case 2: conditioned=True with a ragged batch (exercises padding) ---
    B2 = 13
    params2 = init_params(k[4], embed_dim=D, predictor_layers=(H1, H2), conditioned=True)
    audio2 = jax.random.normal(k[5], (B2, D), jnp.float32)
    clean2 = jax.random.normal(k[6], (B2, D), jnp.float32)
    tp2 = jax.random.uniform(k[7], (B2,), jnp.float32)

    out2 = parameter_equimulooc_forward(params2, audio2, clean2, tp2, conditioned=True)
    preds2 = jax.block_until_ready(out2["predicted_parameters"])
    ref2 = _reference_forward(params2, audio2, clean2,
                              conditioned=True, compute_dtype=jnp.bfloat16)
    assert preds2.shape == (B2, 1)
    assert jnp.allclose(preds2, ref2, atol=1e-3, rtol=1e-3), "conditioned/padded case mismatch"

    print("KERNEL_OK")
</pallas_src>

<mosaic_0001>
module attributes {stable_mosaic.version = 11 : i64} {
  func.func @_predictor_kernel(%arg0: i32, %arg1: memref<8x32xbf16, #tpu.memory_space<vmem>>, %arg2: memref<32x64xbf16, #tpu.memory_space<vmem>>, %arg3: memref<1x64xf32, #tpu.memory_space<vmem>>, %arg4: memref<64x64xbf16, #tpu.memory_space<vmem>>, %arg5: memref<1x64xf32, #tpu.memory_space<vmem>>, %arg6: memref<1x64xf32, #tpu.memory_space<vmem>>, %arg7: memref<1x1xf32, #tpu.memory_space<vmem>>, %arg8: memref<8x1xf32, #tpu.memory_space<vmem>>) attributes {dimension_semantics = [#tpu.dimension_semantics<parallel>], iteration_bounds = array<i64: 1>, scalar_prefetch = 0 : i64, scratch_operands = 0 : i64, tpu.core_type = #tpu.core_type<tc>, window_params = [{transform_indices = @transform_0, window_bounds = array<i64: 8, 32>}, {pipeline_mode = #tpu.pipeline_mode<synchronous>, transform_indices = @transform_1, window_bounds = array<i64: 32, 64>}, {pipeline_mode = #tpu.pipeline_mode<synchronous>, transform_indices = @transform_2, window_bounds = array<i64: 1, 64>}, {pipeline_mode = #tpu.pipeline_mode<synchronous>, transform_indices = @transform_3, window_bounds = array<i64: 64, 64>}, {pipeline_mode = #tpu.pipeline_mode<synchronous>, transform_indices = @transform_4, window_bounds = array<i64: 1, 64>}, {pipeline_mode = #tpu.pipeline_mode<synchronous>, transform_indices = @transform_5, window_bounds = array<i64: 1, 64>}, {pipeline_mode = #tpu.pipeline_mode<synchronous>, transform_indices = @transform_6, window_bounds = array<i64: 1, 1>}, {transform_indices = @transform_7, window_bounds = array<i64: 8, 1>}]} {
    %c0 = arith.constant 0 : index
    %c0_0 = arith.constant 0 : index
    %0 = vector.load %arg1[%c0, %c0_0] : memref<8x32xbf16, #tpu.memory_space<vmem>>, vector<8x32xbf16>
    %c0_1 = arith.constant 0 : index
    %c0_2 = arith.constant 0 : index
    %1 = vector.load %arg2[%c0_1, %c0_2] : memref<32x64xbf16, #tpu.memory_space<vmem>>, vector<32x64xbf16>
    %cst = arith.constant dense<0.000000e+00> : vector<8x64xf32>
    %2 = tpu.matmul %0, %1, %cst {dimension_numbers = #tpu.dot_dimension_numbers<[1], [0], [0], [1], [0, 0, 1, 1], [], []>} : vector<8x32xbf16>, vector<32x64xbf16>, vector<8x64xf32> -> vector<8x64xf32>
    %c0_3 = arith.constant 0 : index
    %c0_4 = arith.constant 0 : index
    %3 = vector.load %arg3[%c0_3, %c0_4] : memref<1x64xf32, #tpu.memory_space<vmem>>, vector<1x64xf32>
    %4 = vector.broadcast %3 : vector<1x64xf32> to vector<8x64xf32>
    %5 = arith.addf %2, %4 : vector<8x64xf32>
    %cst_5 = arith.constant 0.000000e+00 : f32
    %6 = vector.broadcast %cst_5 : f32 to vector<8x64xf32>
    %7 = arith.maximumf %5, %6 : vector<8x64xf32>
    %8 = arith.truncf %7 : vector<8x64xf32> to vector<8x64xbf16>
    %c0_6 = arith.constant 0 : index
    %c0_7 = arith.constant 0 : index
    %9 = vector.load %arg4[%c0_6, %c0_7] : memref<64x64xbf16, #tpu.memory_space<vmem>>, vector<64x64xbf16>
    %cst_8 = arith.constant dense<0.000000e+00> : vector<8x64xf32>
    %10 = tpu.matmul %8, %9, %cst_8 {dimension_numbers = #tpu.dot_dimension_numbers<[1], [0], [0], [1], [0, 0, 1, 1], [], []>} : vector<8x64xbf16>, vector<64x64xbf16>, vector<8x64xf32> -> vector<8x64xf32>
    %c0_9 = arith.constant 0 : index
    %c0_10 = arith.constant 0 : index
    %11 = vector.load %arg5[%c0_9, %c0_10] : memref<1x64xf32, #tpu.memory_space<vmem>>, vector<1x64xf32>
    %12 = vector.broadcast %11 : vector<1x64xf32> to vector<8x64xf32>
    %13 = arith.addf %10, %12 : vector<8x64xf32>
    %cst_11 = arith.constant 0.000000e+00 : f32
    %14 = vector.broadcast %cst_11 : f32 to vector<8x64xf32>
    %15 = arith.maximumf %13, %14 : vector<8x64xf32>
    %c0_12 = arith.constant 0 : index
    %c0_13 = arith.constant 0 : index
    %16 = vector.load %arg6[%c0_12, %c0_13] : memref<1x64xf32, #tpu.memory_space<vmem>>, vector<1x64xf32>
    %17 = vector.broadcast %16 : vector<1x64xf32> to vector<8x64xf32>
    %18 = arith.mulf %15, %17 : vector<8x64xf32>
    %cst_14 = arith.constant dense<0.000000e+00> : vector<8xf32>
    %19 = vector.multi_reduction <add>, %18, %cst_14 [1] : vector<8x64xf32> to vector<8xf32>
    %20 = vector.shape_cast %19 : vector<8xf32> to vector<8x1xf32>
    %c0_15 = arith.constant 0 : index
    %c0_16 = arith.constant 0 : index
    %21 = vector.load %arg7[%c0_15, %c0_16] : memref<1x1xf32, #tpu.memory_space<vmem>>, vector<1x1xf32>
    %22 = vector.broadcast %21 : vector<1x1xf32> to vector<8x1xf32>
    %23 = arith.addf %20, %22 : vector<8x1xf32>
    %c0_17 = arith.constant 0 : index
    %c0_18 = arith.constant 0 : index
    %24 = vector.load %arg8[%c0_17, %c0_18] : memref<8x1xf32, #tpu.memory_space<vmem>>, vector<8x1xf32>
    tpu.vector_store %arg8[%c0_17, %c0_18], %23 {strides = array<i32>} : memref<8x1xf32, #tpu.memory_space<vmem>>, vector<8x1xf32>,
    return
  }
  func.func @transform_0(%arg0: i32) -> (i32, i32) {
    %c0_i32 = arith.constant 0 : i32
    %c0_i32_0 = arith.constant 0 : i32
    return %arg0, %c0_i32 : i32, i32
  }
  func.func @transform_1(%arg0: i32) -> (i32, i32) {
    %c0_i32 = arith.constant 0 : i32
    %c0_i32_0 = arith.constant 0 : i32
    %c0_i32_1 = arith.constant 0 : i32
    return %c0_i32, %c0_i32_0 : i32, i32
  }
  func.func @transform_2(%arg0: i32) -> (i32, i32) {
    %c0_i32 = arith.constant 0 : i32
    %c0_i32_0 = arith.constant 0 : i32
    %c0_i32_1 = arith.constant 0 : i32
    return %c0_i32, %c0_i32_0 : i32, i32
  }
  func.func @transform_3(%arg0: i32) -> (i32, i32) {
    %c0_i32 = arith.constant 0 : i32
    %c0_i32_0 = arith.constant 0 : i32
    %c0_i32_1 = arith.constant 0 : i32
    return %c0_i32, %c0_i32_0 : i32, i32
  }
  func.func @transform_4(%arg0: i32) -> (i32, i32) {
    %c0_i32 = arith.constant 0 : i32
    %c0_i32_0 = arith.constant 0 : i32
    %c0_i32_1 = arith.constant 0 : i32
    return %c0_i32, %c0_i32_0 : i32, i32
  }
  func.func @transform_5(%arg0: i32) -> (i32, i32) {
    %c0_i32 = arith.constant 0 : i32
    %c0_i32_0 = arith.constant 0 : i32
    %c0_i32_1 = arith.constant 0 : i32
    return %c0_i32, %c0_i32_0 : i32, i32
  }
  func.func @transform_6(%arg0: i32) -> (i32, i32) {
    %c0_i32 = arith.constant 0 : i32
    %c0_i32_0 = arith.constant 0 : i32
    %c0_i32_1 = arith.constant 0 : i32
    return %c0_i32, %c0_i32_0 : i32, i32
  }
  func.func @transform_7(%arg0: i32) -> (i32, i32) {
    %c0_i32 = arith.constant 0 : i32
    %c0_i32_0 = arith.constant 0 : i32
    return %arg0, %c0_i32 : i32, i32
  }
}

</mosaic_0001>

<bundles_post_ra>
// kernel: tpu_custom_call.1
= control target key start
LH: loop header
LB: loop body
LE: loop exit
PB: predicated region body
PF: predicated region fallthrough
CT: control target
= control target key end

     0   :  { %s476_s0 = inlined_call_operand.hbm [shape: bf16[8,32], index: 0, kind: input, shape index: {}]   ;;  %s477_s1 = inlined_call_operand.hbm [shape: bf16[32,64], index: 1, kind: input, shape index: {}]   ;;  %s478_s2 = inlined_call_operand.vmem [shape: f32[1,64], index: 2, kind: input, shape index: {}]   ;;  %s479_s3 = inlined_call_operand.hbm [shape: bf16[64,64], index: 3, kind: input, shape index: {}]   ;;  %s480_s4 = inlined_call_operand.vmem [shape: f32[1,64], index: 4, kind: input, shape index: {}]   ;;  %s481_s5 = inlined_call_operand.vmem [shape: f32[1,64], index: 5, kind: input, shape index: {}]   ;;  %s482_s6 = inlined_call_operand.<no memory space> [shape: f32[1,1], index: 6, kind: input, shape index: {}]   ;;  %s483_s7 = inlined_call_operand.vmem [shape: f32[8,1], index: 7, kind: output, shape index: {}]  }
   0x1   :  { %v12_v0 = vstv %s482_s6 }
   0x2   :  { %13 = vst [vmem:[#allocation2] sm:$0x1] %v12_v0 }
   0x3   :  { %14 = vsyncpa [#allocation4], 0 }
   0x4   :  { %15 = vsyncpa [#allocation6], 0  ;;  %s372_s26 = smov [#allocation5]   ;;  %s302_s30 = scalar_lea.hbm %s477_s1, 256 }
   0x5   :  { %s31_s27 = sshll.u32 %s372_s26, 4  ;;  %p303_p0 = scmp.ne.s32.totalorder %s477_s1, %s302_s30  ;;  %s32_s27 = int_to_ptr.vmem [resolvable:$true] %s31_s27 }
   0x6   :  { %p306_p1 = scmp.lt.u32.totalorder %s302_s30, %s477_s1 }
   0x8   :  { %p308_p2 = pnand %p306_p1, %p303_p0 }
   0xa   :  { %311 = shalt.err (!%p308_p2)
}
   0xb   :  { %s312_s6 = scalar_lea.vmem %s32_s27, 256  ;;  %p317_p4 = scmp.lt.s32.totalorder %s32_s27, %s32_s27 }
   0xc   :  { %p313_p3 = scmp.ne.s32.totalorder %s32_s27, %s312_s6  ;;  %p318_p5 = scmp.lt.s32.totalorder %s312_s6, %s312_s6 }
   0xe   :  { %p319_p6 = por %p318_p5, %p317_p4 }
  0x10   :  { %p320_p7 = pnand %p319_p6, %p313_p3 }
  0x12   :  { %323 = shalt.err (!%p320_p7)
}
  0x13   :  { %s373_s12 = smov 64   ;;  %s374_s13 = smov 4  }
  0x14   :  { %37 = dma.hbm_to_vmem [thread:$0]  %s477_s1, 256, %s32_s27, [#allocation6], %s373_s12, %s373_s12, %s374_s13  }
  0x15   :  { %s375_s16 = smov [#allocation3]   ;;  %s376_s18 = smov [#allocation7]  }
  0x16   :  { %s22_s17 = sshll.u32 %s375_s16, 4  ;;  %s45_s19 = sshll.u32 %s376_s18, 4  ;;  %s23_s17 = int_to_ptr.vmem [resolvable:$true] %s22_s17  ;;  %s46_s19 = int_to_ptr.vmem [resolvable:$true] %s45_s19 }
  0x17   :  { %s324_s22 = scalar_lea.hbm %s476_s0, 64 }
  0x18   :  { %p325_p8 = scmp.ne.s32.totalorder %s476_s0, %s324_s22  ;;  %p328_p9 = scmp.lt.u32.totalorder %s324_s22, %s476_s0 }
  0x1a   :  { %p330_p10 = pnand %p328_p9, %p325_p8 }
  0x1c   :  { %333 = shalt.err (!%p330_p10)
}
  0x1d   :  { %s334_s1 = scalar_lea.vmem %s23_s17, 64  ;;  %p339_p12 = scmp.lt.s32.totalorder %s23_s17, %s23_s17 }
  0x1e   :  { %p335_p11 = scmp.ne.s32.totalorder %s23_s17, %s334_s1  ;;  %p340_p13 = scmp.lt.s32.totalorder %s334_s1, %s334_s1 }
  0x20   :  { %p341_p0 = por %p340_p13, %p339_p12 }
  0x22   :  { %p342_p1 = pnand %p341_p0, %p335_p11 }
  0x24   :  { %345 = shalt.err (!%p342_p1)
}
  0x25   :  { %25 = dma.hbm_to_vmem [thread:$0]  %s476_s0, 64, %s23_s17, [#allocation4]  }
  0x26   :  { %s346_s8 = scalar_lea.hbm %s479_s3, 512 }
  0x27   :  { %p347_p2 = scmp.ne.s32.totalorder %s479_s3, %s346_s8  ;;  %p350_p3 = scmp.lt.u32.totalorder %s346_s8, %s479_s3 }
  0x29   :  { %p352_p4 = pnand %p350_p3, %p347_p2 }
  0x2b   :  { %355 = shalt.err (!%p352_p4)
}
  0x2c   :  { %s356_s14 = scalar_lea.vmem %s46_s19, 512  ;;  %p361_p6 = scmp.lt.s32.totalorder %s46_s19, %s46_s19 }
  0x2d   :  { %p357_p5 = scmp.ne.s32.totalorder %s46_s19, %s356_s14  ;;  %p362_p7 = scmp.lt.s32.totalorder %s356_s14, %s356_s14 }
  0x2f   :  { %p363_p8 = por %p362_p7, %p361_p6 }
  0x31   :  { %p364_p9 = pnand %p363_p8, %p357_p5 }
  0x33   :  { %367 = shalt.err (!%p364_p9)
}
  0x34   :  { %51 = dma.hbm_to_vmem [thread:$0]  %s479_s3, 512, %s46_s19, [#allocation6], %s373_s12, %s373_s12, %s374_s13  }
  0x35   :  { %368 = dma.done.wait [#allocation4], 64  }
  0x36   :  { %369 = vsyncadd [#allocation4], 4294967232 }
  0x37   :  { %370 = dma.done.wait [#allocation6], 768  }
  0x38   :  { %371 = vsyncadd [#allocation6], 4294966528  ;;  %v377_v1 = vmov 0.0   ;;  %vm378_vm0 = vmmov 0   ;;  %v296_v2 = vld [vmem:[#allocation5] sm:$0xff]   ;;  %v297_v3 = vld [vmem:[#allocation5 + $0x8] sm:$0xff]  }
  0x39   :  { %269 = vmatprep.subr.bf16.mxu0 %v377_v1  ;;  %273 = vmatprep.mubr.msk.bf16.mxu0 %vm378_vm0, %v377_v1  ;;  %v298_v4 = vld [vmem:[#allocation7] sm:$0xff]   ;;  %v299_v5 = vld [vmem:[#allocation7 + $0x8] sm:$0xff]   ;;  %vm92_vm1 = vcmask 261120   ;;  %v300_v7 = vld [vmem:[#allocation7 + $0x10] sm:$0xff]   ;;  %vm177_vm2 = vcmask 523264   ;;  %vm241_vm3 = vcmask 7168  }
  0x3a   :  { %277 = vmatprep.subr.bf16.mxu1 %v377_v1  ;;  %285 = vmatprep.mubr.msk.bf16.mxu1 %vm378_vm0, %v377_v1  ;;  %v68_v6 = vld [vmem:[#allocation3] sm:$0xf]  ;;  %v301_v8 = vld [vmem:[#allocation7 + $0x18] sm:$0xff]   ;;  %v249_v9 = vld [vmem:[%s478_s2] ss:$0 sm:$0xff] }
  0x3b   :  { %270 = vmatpush3.bf16.msra.mxu0 %v296_v2  ;;  %278 = vmatpush3.bf16.msra.mxu1 %v298_v4  ;;  %v253_v17 = vld [vmem:[%s480_s4] ss:$0 sm:$0xff] }
  0x3c   :  { %271 = vmatprep.subr.bf16.mxu0 %v377_v1  ;;  %279 = vmatprep.subr.bf16.mxu1 %v377_v1  ;;  %v259_v22 = vld [vmem:[%s481_s5] ss:$0 sm:$0xff] }
  0x3d   :  { %v260_v27 = vld [vmem:[#allocation2] ss:$0 sm:$0xff] }
  0x3f   :  { %272 = vmatpush3.bf16.msra.mxu0 %v297_v3  ;;  %280 = vmatpush3.bf16.msra.mxu1 %v299_v5 }
  0x40   :  { %281 = vmatprep.subr.bf16.mxu1 %v377_v1 }
  0x42   :  { %274 = vmatmul.mubr.msk.bf16.vlgmr.msra.gmra.mrb[0].mxu0 %vm92_vm1, %v68_v6 }
  0x43   :  { %282 = vmatpush3.bf16.msra.mxu1 %v300_v7 }
  0x44   :  { %283 = vmatprep.subr.bf16.mxu1 %v377_v1 }
  0x47   :  { %284 = vmatpush3.bf16.msra.mxu1 %v301_v8 }
 0x115   :  { %v130_v10 = vpop.f32.mrb[0].mxu0 }
 0x116   :  { %v131_v11 = vadd.f32 %v249_v9, %v130_v10  ;;  %v275_v12 = vpop.f32.mrb[1].mxu0 }
 0x117   :  { %v133_v13 = vpop.f32.mrb[2].mxu0 }
 0x118   :  { %v136_v14 = vmax.f32 %v131_v11, 0.0  ;;  %v276_v15 = vpop.f32.mrb[3].mxu0 }
 0x11a   :  { %v137_v16 = vpack.c.bf16 %v136_v14, %v136_v14 }
 0x11c   :  { %286 = vmatmul.mubr.msk.bf16.vlgmr.msra.gmra.mrb[0].mxu1 %vm177_vm2, %v137_v16 }
 0x1ef   :  { %v215_v18 = vpop.f32.mrb[0].mxu1 }
 0x1f0   :  { %v216_v19 = vadd.f32 %v253_v17, %v215_v18  ;;  %v287_v20 = vpop.f32.mrb[1].mxu1 }
 0x1f1   :  { %v218_v21 = vpop.f32.mrb[2].mxu1 }
 0x1f2   :  { %v221_v23 = vmax.f32 %v216_v19, 0.0  ;;  %v288_v24 = vpop.f32.mrb[3].mxu1 }
 0x1f4   :  { %v229_v25 = vmul.f32 %v259_v22, %v221_v23 }
 0x1f6   :  { %v230_v26 = vsel %vm177_vm2, %v229_v25, 0.0 }
 0x1f7   :  { %231 = vadd.xlane.f32.xlu0 %v230_v26 }
 0x284   :  { %v232_v28 = vpop.xlane.xlu0 %231 }
 0x285   :  { %v240_v29 = vadd.f32 %v260_v27, %v232_v28 }
 0x287   :  { %242 = vst.msk [vmem:[%s483_s7] sm:$0xff] %vm241_vm3, %v240_v29 }
 0x288   :  { %247 = vsyncpa [#allocation4], 1 }
 0x289   :  { %248 = vsyncpa [#allocation6], 1 }

</bundles_post_ra>
